<compile_context>
chip_gen: v6e
topology: v6e:2x2x1
jax: 0.10.0
libtpu: 0.0.40
codegen_flags: <defaults>
</compile_context>

<pallas_src>
import functools

import jax
import jax.numpy as jnp
from jax.experimental import pallas as pl
from jax.experimental.pallas import tpu as pltpu


def _round_up(x, m):
    return ((x + m - 1) // m) * m


def _decoder_kernel(num_layers, use_bf16,
                    x_ref, rep_ref, w0r_ref, w0x_ref, b0_ref, *refs):
    """refs = (w1, b1, ..., w_{L-1}, b_{L-1}, out_ref).

    x_ref   : (1, d, tile_s)   target_x slab, transposed (lane-dense over set)
    rep_ref : (B, R)           full representation, VMEM-resident
    w0r_ref : (H0, R)          layer-0 weight, representation columns
    w0x_ref : (H0, d)          layer-0 weight, target_x columns
    b0_ref  : (H0, 1)
    w_i     : (out_i, in_i)    PyTorch layout
    b_i     : (out_i, 1)
    out_ref : (1, 2, tile_s)   row 0 = mu, row 1 = sigma (lane-dense)
    """
    param_refs = refs[:-1]
    out_ref = refs[-1]
    b = pl.program_id(0)

    # ---- layer 0: split into target_x part (per set point) + rep part (per batch row)
    xt = x_ref[0, :, :]                                   # (d, tile_s)
    rep_row = rep_ref[pl.ds(b, 1), :]                     # (1, R) dynamic sublane slice
    # (H0, R) * (1, R) summed over lanes -> (H0, 1); tiny VPU/XLU work, avoids an
    # MXU pass whose output would be 99% padding.
    rep_contrib = jnp.sum(w0r_ref[...] * rep_row, axis=1, keepdims=True)

    h = jnp.dot(w0x_ref[...], xt, preferred_element_type=jnp.float32)  # (H0, tile_s)
    h = h + rep_contrib + b0_ref[...]
    if num_layers > 1:
        h = jnp.maximum(h, 0.0)                           # torch.relu

    # ---- remaining layers
    for i in range(1, num_layers):
        w = param_refs[2 * (i - 1)][...]
        bcol = param_refs[2 * (i - 1) + 1][...]
        lhs, rhs = w, h
        if use_bf16 and i < num_layers - 1:
            # hidden layers only: bf16 inputs, f32 accumulation (v6e/v7x MXU path)
            lhs = lhs.astype(jnp.bfloat16)
            rhs = rhs.astype(jnp.bfloat16)
        h = jnp.dot(lhs, rhs, preferred_element_type=jnp.float32) + bcol
        if i < num_layers - 1:
            h = jnp.maximum(h, 0.0)

    # ---- mu / sigma (torch.split(out, 1, dim=-1) on the feature axis, which is
    # the sublane axis here), then sigma = 0.1 + 0.9 * softplus(log_sigma)
    mu = h[0:1, :]                                        # (1, tile_s)
    log_sigma = h[1:2, :]
    softplus = jnp.maximum(log_sigma, 0.0) + jnp.log1p(jnp.exp(-jnp.abs(log_sigma)))
    sigma = 0.1 + 0.9 * softplus
    out_ref[0, :, :] = jnp.concatenate([mu, sigma], axis=0)   # single fused, lane-dense store
    # TODO(synk): torch.distributions.Normal has no Pallas/JAX-array equivalent;
    # we return (mu, sigma) which fully parameterize it.


def deterministic_decoder(representation, target_x, weights, biases, *,
                          set_tile=None, use_bf16=False):
    """JAX/Pallas equivalent of DeterministicDecoder.forward.

    representation: (B, R) float32
    target_x:       (B, S, d) float32
    weights[i]:     (sizes[i+1], sizes[i])  -- PyTorch (out_features, in_features)
    biases[i]:      (sizes[i+1],)
    Returns (mu, sigma), each (B, S, 1) float32.
    """
    B, S, d = target_x.shape
    R = representation.shape[-1]
    num_layers = len(weights)
    assert num_layers >= 1
    assert weights[0].shape[1] == R + d, "layer-0 in_features must equal R + d"
    assert weights[-1].shape[0] == 2, "last layer must produce (mu, log_sigma)"

    # --- tile selection: lane-dense set tiles, multiple of 128, capped at 512
    if set_tile is None:
        set_tile = min(512, _round_up(S, 128))
    else:
        set_tile = max(128, _round_up(set_tile, 128))
    S_pad = _round_up(S, set_tile)
    num_s_tiles = S_pad // set_tile

    # --- layout glue (tiny: only d*B*S + B*R floats; NO (B*S, R+d) concat slab)
    x_t = jnp.swapaxes(target_x.astype(jnp.float32), 1, 2)      # (B, d, S)
    if S_pad != S:
        x_t = jnp.pad(x_t, ((0, 0), (0, 0), (0, S_pad - S)))    # zero tail, sliced off later
    rep = representation.astype(jnp.float32)                    # (B, R)

    # --- split layer-0 weight into representation / target_x column groups
    w0 = jnp.asarray(weights[0], jnp.float32)                   # (H0, R + d)
    w0_rep = w0[:, :R]                                          # (H0, R)
    w0_x = w0[:, R:]                                            # (H0, d)
    b0 = jnp.asarray(biases[0], jnp.float32).reshape(-1, 1)     # (H0, 1)

    inputs = [x_t, rep, w0_rep, w0_x, b0]
    in_specs = [
        pl.BlockSpec((1, d, set_tile), lambda b, s: (b, 0, s)),
        pl.BlockSpec(rep.shape, lambda b, s: (0, 0)),       # whole rep resident in VMEM
        pl.BlockSpec(w0_rep.shape, lambda b, s: (0, 0)),
        pl.BlockSpec(w0_x.shape, lambda b, s: (0, 0)),
        pl.BlockSpec(b0.shape, lambda b, s: (0, 0)),
    ]
    for i in range(1, num_layers):
        w = jnp.asarray(weights[i], jnp.float32)                # (out_i, in_i)
        bcol = jnp.asarray(biases[i], jnp.float32).reshape(-1, 1)
        inputs += [w, bcol]
        in_specs += [pl.BlockSpec(w.shape, lambda b, s: (0, 0)),
                     pl.BlockSpec(bcol.shape, lambda b, s: (0, 0))]

    out_shape = jax.ShapeDtypeStruct((B, 2, S_pad), jnp.float32)
    out_specs = pl.BlockSpec((1, 2, set_tile), lambda b, s: (b, 0, s))

    out = pl.pallas_call(
        functools.partial(_decoder_kernel, num_layers, use_bf16),
        grid=(B, num_s_tiles),
        in_specs=in_specs,
        out_specs=out_specs,
        out_shape=out_shape,
        compiler_params=pltpu.CompilerParams(
            dimension_semantics=("parallel", "parallel"),   # megacore-shardable on v7x
            vmem_limit_bytes=32 * 1024 * 1024,              # explicit, v7x(64MiB)-safe
        ),
    )(*inputs)

    mu = out[:, 0, :S].reshape(B, S, 1)
    sigma = out[:, 1, :S].reshape(B, S, 1)
    return mu, sigma


def _init_params(key, sizes):
    """PyTorch-Linear-style init: U(-1/sqrt(fan_in), 1/sqrt(fan_in)), (out, in) layout."""
    weights, biases = [], []
    for i in range(len(sizes) - 1):
        fan_in, fan_out = sizes[i], sizes[i + 1]
        key, kw, kb = jax.random.split(key, 3)
        bound = 1.0 / (fan_in ** 0.5)
        w = jax.random.uniform(kw, (fan_out, fan_in), jnp.float32, -bound, bound)
        b = jax.random.uniform(kb, (fan_out,), jnp.float32, -bound, bound)
        weights.append(w)
        biases.append(b)
    return weights, biases


def _reference(representation, target_x, weights, biases):
    """Pure-JAX reference matching the PyTorch forward (weights in (out, in) layout)."""
    B, S, d = target_x.shape
    rep = jnp.broadcast_to(representation[:, None, :], (B, S, representation.shape[-1]))
    h = jnp.concatenate([rep, target_x], axis=-1).reshape(B * S, -1)
    for i, (w, b) in enumerate(zip(weights, biases)):
        h = h @ w.T + b
        if i < len(weights) - 1:
            h = jnp.maximum(h, 0.0)
    out = h.reshape(B, S, -1)
    mu, log_sigma = out[..., 0:1], out[..., 1:2]
    sigma = 0.1 + 0.9 * jax.nn.softplus(log_sigma)
    return mu, sigma


if __name__ == "__main__":
    key = jax.random.PRNGKey(0)

    # Small shapes consistent with the module's forward:
    #   representation: (B, R), target_x: (B, S, d), sizes = [R + d, 32, 32, 2]
    B, S, d, R = 2, 8, 2, 30
    sizes = [R + d, 32, 32, 2]

    key, k_rep, k_x, k_p = jax.random.split(key, 4)
    representation = jax.random.normal(k_rep, (B, R), jnp.float32)
    target_x = jax.random.normal(k_x, (B, S, d), jnp.float32)
    weights, biases = _init_params(k_p, sizes)

    mu, sigma = deterministic_decoder(representation, target_x, weights, biases)
    mu, sigma = jax.block_until_ready((mu, sigma))

    mu_ref, sigma_ref = _reference(representation, target_x, weights, biases)
    assert mu.shape == (B, S, 1) and sigma.shape == (B, S, 1)
    assert jnp.allclose(mu, mu_ref, atol=1e-4, rtol=1e-4)
    assert jnp.allclose(sigma, sigma_ref, atol=1e-4, rtol=1e-4)

    # Second config: exercises multiple set tiles + zero-padded tail (S=200, tile=128).
    B2, S2 = 3, 200
    k1, k2 = jax.random.split(key)
    rep2 = jax.random.normal(k1, (B2, R), jnp.float32)
    tx2 = jax.random.normal(k2, (B2, S2, d), jnp.float32)
    mu2, sigma2 = deterministic_decoder(rep2, tx2, weights, biases, set_tile=128)
    mu2, sigma2 = jax.block_until_ready((mu2, sigma2))
    mu2_ref, sigma2_ref = _reference(rep2, tx2, weights, biases)
    assert mu2.shape == (B2, S2, 1) and sigma2.shape == (B2, S2, 1)
    assert jnp.allclose(mu2, mu2_ref, atol=1e-4, rtol=1e-4)
    assert jnp.allclose(sigma2, sigma2_ref, atol=1e-4, rtol=1e-4)

    # bf16 hidden-matmul path (v6e/v7x MXU); loose tolerance, f32 accumulation.
    mu3, sigma3 = deterministic_decoder(rep2, tx2, weights, biases,
                                        set_tile=128, use_bf16=True)
    mu3, sigma3 = jax.block_until_ready((mu3, sigma3))
    assert jnp.allclose(mu3, mu2_ref, atol=0.15, rtol=0.15)
    assert jnp.allclose(sigma3, sigma2_ref, atol=0.15, rtol=0.15)

    print("KERNEL_OK")
</pallas_src>

<mosaic_0001>
module attributes {stable_mosaic.version = 11 : i64} {
  func.func @_decoder_kernel(%arg0: i32, %arg1: i32, %arg2: memref<1x2x128xf32, #tpu.memory_space<vmem>>, %arg3: memref<2x30xf32, #tpu.memory_space<vmem>>, %arg4: memref<32x30xf32, #tpu.memory_space<vmem>>, %arg5: memref<32x2xf32, #tpu.memory_space<vmem>>, %arg6: memref<32x1xf32, #tpu.memory_space<vmem>>, %arg7: memref<32x32xf32, #tpu.memory_space<vmem>>, %arg8: memref<32x1xf32, #tpu.memory_space<vmem>>, %arg9: memref<2x32xf32, #tpu.memory_space<vmem>>, %arg10: memref<2x1xf32, #tpu.memory_space<vmem>>, %arg11: memref<1x2x128xf32, #tpu.memory_space<vmem>>) attributes {dimension_semantics = [#tpu.dimension_semantics<parallel>, #tpu.dimension_semantics<parallel>], iteration_bounds = array<i64: 2, 1>, scalar_prefetch = 0 : i64, scratch_operands = 0 : i64, tpu.core_type = #tpu.core_type<tc>, window_params = [{transform_indices = @transform_0, window_bounds = array<i64: 1, 2, 128>}, {pipeline_mode = #tpu.pipeline_mode<synchronous>, transform_indices = @transform_1, window_bounds = array<i64: 2, 30>}, {pipeline_mode = #tpu.pipeline_mode<synchronous>, transform_indices = @transform_2, window_bounds = array<i64: 32, 30>}, {pipeline_mode = #tpu.pipeline_mode<synchronous>, transform_indices = @transform_3, window_bounds = array<i64: 32, 2>}, {pipeline_mode = #tpu.pipeline_mode<synchronous>, transform_indices = @transform_4, window_bounds = array<i64: 32, 1>}, {pipeline_mode = #tpu.pipeline_mode<synchronous>, transform_indices = @transform_5, window_bounds = array<i64: 32, 32>}, {pipeline_mode = #tpu.pipeline_mode<synchronous>, transform_indices = @transform_6, window_bounds = array<i64: 32, 1>}, {pipeline_mode = #tpu.pipeline_mode<synchronous>, transform_indices = @transform_7, window_bounds = array<i64: 2, 32>}, {pipeline_mode = #tpu.pipeline_mode<synchronous>, transform_indices = @transform_8, window_bounds = array<i64: 2, 1>}, {transform_indices = @transform_9, window_bounds = array<i64: 1, 2, 128>}]} {
    %c0 = arith.constant 0 : index
    %c0_0 = arith.constant 0 : index
    %c0_1 = arith.constant 0 : index
    %0 = vector.load %arg2[%c0, %c0_0, %c0_1] : memref<1x2x128xf32, #tpu.memory_space<vmem>>, vector<1x2x128xf32>
    %1 = vector.shape_cast %0 : vector<1x2x128xf32> to vector<2x128xf32>
    %2 = arith.index_cast %arg0 : i32 to index
    %c0_2 = arith.constant 0 : index
    %3 = vector.load %arg3[%2, %c0_2] : memref<2x30xf32, #tpu.memory_space<vmem>>, vector<1x30xf32>
    %c0_3 = arith.constant 0 : index
    %c0_4 = arith.constant 0 : index
    %4 = vector.load %arg4[%c0_3, %c0_4] : memref<32x30xf32, #tpu.memory_space<vmem>>, vector<32x30xf32>
    %5 = vector.broadcast %3 : vector<1x30xf32> to vector<32x30xf32>
    %6 = arith.mulf %4, %5 : vector<32x30xf32>
    %cst = arith.constant dense<0.000000e+00> : vector<32xf32>
    %7 = vector.multi_reduction <add>, %6, %cst [1] : vector<32x30xf32> to vector<32xf32>
    %8 = vector.shape_cast %7 : vector<32xf32> to vector<32x1xf32>
    %c0_5 = arith.constant 0 : index
    %c0_6 = arith.constant 0 : index
    %9 = vector.load %arg5[%c0_5, %c0_6] : memref<32x2xf32, #tpu.memory_space<vmem>>, vector<32x2xf32>
    %cst_7 = arith.constant dense<0.000000e+00> : vector<32x128xf32>
    %10 = tpu.matmul %9, %1, %cst_7 {dimension_numbers = #tpu.dot_dimension_numbers<[1], [0], [0], [1], [0, 0, 1, 1], [], []>} : vector<32x2xf32>, vector<2x128xf32>, vector<32x128xf32> -> vector<32x128xf32>
    %11 = vector.broadcast %8 : vector<32x1xf32> to vector<32x128xf32>
    %12 = arith.addf %10, %11 : vector<32x128xf32>
    %c0_8 = arith.constant 0 : index
    %c0_9 = arith.constant 0 : index
    %13 = vector.load %arg6[%c0_8, %c0_9] : memref<32x1xf32, #tpu.memory_space<vmem>>, vector<32x1xf32>
    %14 = vector.broadcast %13 : vector<32x1xf32> to vector<32x128xf32>
    %15 = arith.addf %12, %14 : vector<32x128xf32>
    %cst_10 = arith.constant 0.000000e+00 : f32
    %16 = vector.broadcast %cst_10 : f32 to vector<32x128xf32>
    %17 = arith.maximumf %15, %16 : vector<32x128xf32>
    %c0_11 = arith.constant 0 : index
    %c0_12 = arith.constant 0 : index
    %18 = vector.load %arg7[%c0_11, %c0_12] : memref<32x32xf32, #tpu.memory_space<vmem>>, vector<32x32xf32>
    %c0_13 = arith.constant 0 : index
    %c0_14 = arith.constant 0 : index
    %19 = vector.load %arg8[%c0_13, %c0_14] : memref<32x1xf32, #tpu.memory_space<vmem>>, vector<32x1xf32>
    %cst_15 = arith.constant dense<0.000000e+00> : vector<32x128xf32>
    %20 = tpu.matmul %18, %17, %cst_15 {dimension_numbers = #tpu.dot_dimension_numbers<[1], [0], [0], [1], [0, 0, 1, 1], [], []>} : vector<32x32xf32>, vector<32x128xf32>, vector<32x128xf32> -> vector<32x128xf32>
    %21 = vector.broadcast %19 : vector<32x1xf32> to vector<32x128xf32>
    %22 = arith.addf %20, %21 : vector<32x128xf32>
    %cst_16 = arith.constant 0.000000e+00 : f32
    %23 = vector.broadcast %cst_16 : f32 to vector<32x128xf32>
    %24 = arith.maximumf %22, %23 : vector<32x128xf32>
    %c0_17 = arith.constant 0 : index
    %c0_18 = arith.constant 0 : index
    %25 = vector.load %arg9[%c0_17, %c0_18] : memref<2x32xf32, #tpu.memory_space<vmem>>, vector<2x32xf32>
    %c0_19 = arith.constant 0 : index
    %c0_20 = arith.constant 0 : index
    %26 = vector.load %arg10[%c0_19, %c0_20] : memref<2x1xf32, #tpu.memory_space<vmem>>, vector<2x1xf32>
    %cst_21 = arith.constant dense<0.000000e+00> : vector<2x128xf32>
    %27 = tpu.matmul %25, %24, %cst_21 {dimension_numbers = #tpu.dot_dimension_numbers<[1], [0], [0], [1], [0, 0, 1, 1], [], []>} : vector<2x32xf32>, vector<32x128xf32>, vector<2x128xf32> -> vector<2x128xf32>
    %28 = vector.broadcast %26 : vector<2x1xf32> to vector<2x128xf32>
    %29 = arith.addf %27, %28 : vector<2x128xf32>
    %30 = vector.extract_strided_slice %29 {offsets = [0, 0], sizes = [1, 128], strides = [1, 1]} : vector<2x128xf32> to vector<1x128xf32>
    %31 = vector.extract_strided_slice %29 {offsets = [1, 0], sizes = [1, 128], strides = [1, 1]} : vector<2x128xf32> to vector<1x128xf32>
    %cst_22 = arith.constant 0.000000e+00 : f32
    %32 = vector.broadcast %cst_22 : f32 to vector<1x128xf32>
    %33 = arith.maximumf %31, %32 : vector<1x128xf32>
    %34 = math.absf %31 : vector<1x128xf32>
    %cst_23 = arith.constant 0.000000e+00 : f32
    %35 = vector.broadcast %cst_23 : f32 to vector<1x128xf32>
    %36 = arith.subf %35, %34 : vector<1x128xf32>
    %37 = math.exp %36 : vector<1x128xf32>
    %38 = math.log1p %37 : vector<1x128xf32>
    %39 = arith.addf %33, %38 : vector<1x128xf32>
    %cst_24 = arith.constant 0.899999976 : f32
    %40 = vector.broadcast %cst_24 : f32 to vector<1x128xf32>
    %41 = arith.mulf %40, %39 : vector<1x128xf32>
    %cst_25 = arith.constant 1.000000e-01 : f32
    %42 = vector.broadcast %cst_25 : f32 to vector<1x128xf32>
    %43 = arith.addf %42, %41 : vector<1x128xf32>
    %44 = tpu.concatenate %30, %43 in 0 : vector<1x128xf32>, vector<1x128xf32> -> vector<2x128xf32>
    %c0_26 = arith.constant 0 : index
    %c0_27 = arith.constant 0 : index
    %c0_28 = arith.constant 0 : index
    %45 = vector.load %arg11[%c0_26, %c0_27, %c0_28] : memref<1x2x128xf32, #tpu.memory_space<vmem>>, vector<1x2x128xf32>
    %46 = vector.shape_cast %45 : vector<1x2x128xf32> to vector<2x128xf32>
    %47 = vector.shape_cast %44 : vector<2x128xf32> to vector<1x2x128xf32>
    tpu.vector_store %arg11[%c0_26, %c0_27, %c0_28], %47 {strides = array<i32>} : memref<1x2x128xf32, #tpu.memory_space<vmem>>, vector<1x2x128xf32>,
    return
  }
  func.func @transform_0(%arg0: i32, %arg1: i32) -> (i32, i32, i32) {
    %c0_i32 = arith.constant 0 : i32
    %c0_i32_0 = arith.constant 0 : i32
    return %arg0, %c0_i32, %arg1 : i32, i32, i32
  }
  func.func @transform_1(%arg0: i32, %arg1: i32) -> (i32, i32) {
    %c0_i32 = arith.constant 0 : i32
    %c0_i32_0 = arith.constant 0 : i32
    %c0_i32_1 = arith.constant 0 : i32
    return %c0_i32, %c0_i32_0 : i32, i32
  }
  func.func @transform_2(%arg0: i32, %arg1: i32) -> (i32, i32) {
    %c0_i32 = arith.constant 0 : i32
    %c0_i32_0 = arith.constant 0 : i32
    %c0_i32_1 = arith.constant 0 : i32
    return %c0_i32, %c0_i32_0 : i32, i32
  }
  func.func @transform_3(%arg0: i32, %arg1: i32) -> (i32, i32) {
    %c0_i32 = arith.constant 0 : i32
    %c0_i32_0 = arith.constant 0 : i32
    %c0_i32_1 = arith.constant 0 : i32
    return %c0_i32, %c0_i32_0 : i32, i32
  }
  func.func @transform_4(%arg0: i32, %arg1: i32) -> (i32, i32) {
    %c0_i32 = arith.constant 0 : i32
    %c0_i32_0 = arith.constant 0 : i32
    %c0_i32_1 = arith.constant 0 : i32
    return %c0_i32, %c0_i32_0 : i32, i32
  }
  func.func @transform_5(%arg0: i32, %arg1: i32) -> (i32, i32) {
    %c0_i32 = arith.constant 0 : i32
    %c0_i32_0 = arith.constant 0 : i32
    %c0_i32_1 = arith.constant 0 : i32
    return %c0_i32, %c0_i32_0 : i32, i32
  }
  func.func @transform_6(%arg0: i32, %arg1: i32) -> (i32, i32) {
    %c0_i32 = arith.constant 0 : i32
    %c0_i32_0 = arith.constant 0 : i32
    %c0_i32_1 = arith.constant 0 : i32
    return %c0_i32, %c0_i32_0 : i32, i32
  }
  func.func @transform_7(%arg0: i32, %arg1: i32) -> (i32, i32) {
    %c0_i32 = arith.constant 0 : i32
    %c0_i32_0 = arith.constant 0 : i32
    %c0_i32_1 = arith.constant 0 : i32
    return %c0_i32, %c0_i32_0 : i32, i32
  }
  func.func @transform_8(%arg0: i32, %arg1: i32) -> (i32, i32) {
    %c0_i32 = arith.constant 0 : i32
    %c0_i32_0 = arith.constant 0 : i32
    %c0_i32_1 = arith.constant 0 : i32
    return %c0_i32, %c0_i32_0 : i32, i32
  }
  func.func @transform_9(%arg0: i32, %arg1: i32) -> (i32, i32, i32) {
    %c0_i32 = arith.constant 0 : i32
    %c0_i32_0 = arith.constant 0 : i32
    return %arg0, %c0_i32, %arg1 : i32, i32, i32
  }
}

</mosaic_0001>

<bundles_post_ra>
// kernel: tpu_custom_call.1
= control target key start
LH: loop header
LB: loop body
LE: loop exit
PB: predicated region body
PF: predicated region fallthrough
CT: control target
= control target key end

     0   :  { %14 = vsyncpa [#allocation3], 0  ;;  %s1293_s0 = inlined_call_operand.vmem [shape: f32[2,2,128], index: 0, kind: input, shape index: {}]   ;;  %s1294_s1 = inlined_call_operand.vmem [shape: f32[2,30], index: 1, kind: input, shape index: {}]   ;;  %s1295_s2 = inlined_call_operand.vmem [shape: f32[32,30], index: 2, kind: input, shape index: {}]   ;;  %s1296_s3 = inlined_call_operand.vmem [shape: f32[32,2], index: 3, kind: input, shape index: {}]   ;;  %s1297_s4 = inlined_call_operand.vmem [shape: f32[32,1], index: 4, kind: input, shape index: {}]   ;;  %s1298_s5 = inlined_call_operand.vmem [shape: f32[32,32], index: 5, kind: input, shape index: {}]   ;;  %s1299_s6 = inlined_call_operand.vmem [shape: f32[32,1], index: 6, kind: input, shape index: {}]   ;;  %s1300_s7 = inlined_call_operand.vmem [shape: f32[2,32], index: 7, kind: input, shape index: {}]   ;;  %s1301_s8 = inlined_call_operand.vmem [shape: f32[2,1], index: 8, kind: input, shape index: {}]   ;;  %s1302_s9 = inlined_call_operand.hbm [shape: f32[2,2,128], index: 9, kind: output, shape index: {}]  }
   0x1   :  { %16 = vsyncpa [#allocation3 + $0x1], 0  ;;  %s1105_s30 = smov 0   ;;  %s1107_s10 = smov 0  }
   0x2   :  { %s1109_s11 = smov 0   ;;  %s1111_s12 = smov 0  }
   0x3   :  { %s1113_s13 = smov 0   ;;  %s1115_s14 = smov 0  }
   0x4 LB: > { %s836_s15 = sadd.s32 4294967295, %s1049_s14   ;;  %s837_s16 = sadd.s32 4294967294, %s1049_s14   ;;  %s1049_s14 = sphi %s1115_s14, %s22_s14   ;;  %s1045_s13 = sphi %s1113_s13, %s1309_s13   ;;  %s1041_s12 = sphi %s1111_s12, %s1308_s12   ;;  %s1037_s11 = sphi %s1109_s11, %s1307_s11   ;;  %s1033_s10 = sphi %s1107_s10, %s1306_s10   ;;  %s1029_s30 = sphi %s1105_s30, %s1305_s30  }
   0x5   : > { %s34_s17 = sadd.s32 1, %s1045_s13  ;;  %s239_s18 = sadd.s32 1, %s1037_s11 }
   0x6   : > { %p36_p0 = scmp.ge.s32.totalorder %s34_s17, 2  ;;  %p249_p1 = scmp.ne.s32.totalorder %s1037_s11, %s1033_s10 }
   0x7   : > { %p250_p2 = scmp.eq.s32.totalorder %s836_s15, 1  ;;  %p255_p3 = scmp.ne.s32.totalorder %s1033_s10, %s1029_s30 }
   0x8   : > { %s1311_s17 = smov (%p36_p0, %s34_s17), 0  ;;  %p256_p5 = scmp.eq.s32.totalorder %s837_s16, 1 }
   0x9   : > { %p1145_p4 = por %p250_p2, %p249_p1  ;;  %s234_s20 = ssub.s32 %s1045_s13, %s1311_s17 }
   0xa   : > { %p840_p6 = scmp.ge.s32.totalorder %s1049_s14, 1  ;;  %p237_p7 = scmp.eq.s32.totalorder %s234_s20, 0 }
   0xb   : > { %p1152_p8 = por %p256_p5, %p255_p3  ;;  %p308_p9 = scmp.lt.s32.totalorder %s1049_s14, 3 }
   0xc   : > { %s1158_s22 = scalar_select %p237_p7, %s1037_s11, %s239_s18  }
   0xd   : > { %p309_p10 = pnand %p840_p6, %p308_p9 }
   0xe   : > { %p346_p11 = scmp.lt.s32.totalorder (!%p309_p10), %s1041_s12, 1  ;;  %s354_s27 = scalar_lea.vmem (!%p309_p10), %s1294_s1, %s1041_s12 }
   0xf   : > { %312 = sbr.rel (%p309_p10) target bundleno = 701 (0x2bd), region = 56  ;;  %s343_s18 = sand.u32 (!%p309_p10), 1, %s1033_s10  }
  0x10   : > { %s855_s20 = sshll.u32 (!%p309_p10), %s1041_s12, 5  ;;  %s750_s28 = scalar_lea.sflag (!%p309_p10), [#allocation3], %s343_s18 }
  0x11   : > { %s1054_s16 = smov (!%p309_p10), [#allocation2]  }
  0x14   : > { %v381_v0 = vld [vmem:[%s1296_s3] sm:$0xff]  ;;  %vm385_vm0 = vcmask 15360   ;;  %v357_v2 = vld [vmem:[%s1295_s2 + $0x8] sm:$0xff]  ;;  %vm368_vm1 = vcmask 244736   ;;  %s347_s15 = scalar_select %p346_p11, %s1041_s12, 1  ;;  %v1051_v5 = vmov 0  }
  0x15   : > { %878 = vmatprep.mubr.msk.f32.mxu0 %vm385_vm0, %v381_v0  ;;  %v843_v1 = vld [vmem:[%s354_s27] ss:$0 sm:$0xff]  ;;  %968 = vset.pattern.permute.xlu1 %v1051_v5  ;;  %v359_v6 = vld [vmem:[%s1295_s2 + $0x18] sm:$0xff]  ;;  %v358_v9 = vld [vmem:[%s1295_s2 + $0x10] sm:$0xff]  ;;  %vm398_vm2 = vcmask 1041408   ;;  %vm547_vm3 = vcmask 261120   ;;  %s1253_s27 = scalar_lea.hbm %s1302_s9, %s855_s20 }
  0x16   : > { %v365_v3 = vmul.f32 %v843_v1, %v357_v2  ;;  %v356_v4 = vld [vmem:[%s1295_s2] sm:$0xff]  ;;  %967 = vset.pattern.permute.xlu0 %v1051_v5  ;;  %v367_v8 = vmul.f32 %v843_v1, %v359_v6  ;;  %s842_s26 = sshll.u32 %s347_s15, 1  ;;  %v366_v11 = vmul.f32 %v843_v1, %v358_v9  ;;  %v382_v14 = vld [vmem:[%s1296_s3 + $0x8] sm:$0xff]  ;;  %v383_v16 = vld [vmem:[%s1296_s3 + $0x10] sm:$0xff]  ;;  %v1052_v56 = vmov 0.0   ;;  %s841_s15 = sshll.u32 %s343_s18, 1 }
  0x17   : > { %v364_v7 = vmul.f32 %v843_v1, %v356_v4  ;;  %s352_s29 = scalar_lea.vmem %s1293_s0, %s842_s26  ;;  %v384_v18 = vld [vmem:[%s1296_s3 + $0x18] sm:$0xff]  ;;  %v489_v19 = vld [vmem:[%s1297_s4 + $0x10] sm:$0xff]  ;;  %v488_v20 = vld [vmem:[%s1297_s4 + $0x8] sm:$0xff]  ;;  %vm1053_vm4 = vmmov 0   ;;  %s345_s23 = scalar_lea.vmem [#allocation2], %s841_s15  ;;  %vm746_vm6 = vcmask 1040384  }
  0x18   : > { %v372_v10 = vsel %vm368_vm1, %v365_v3, 0.0  ;;  %v378_v12 = vsel %vm368_vm1, %v367_v8, 0.0  ;;  %v353_v13 = vld [vmem:[%s352_s29] sm:$0x3]  ;;  %v375_v17 = vsel %vm368_vm1, %v366_v11, 0.0  ;;  %v490_v21 = vld [vmem:[%s1297_s4 + $0x18] sm:$0xff] }
  0x19   : > { %373 = vadd.xlane.f32.xlu1 %v372_v10  ;;  %v369_v15 = vsel %vm368_vm1, %v364_v7, 0.0  ;;  %379 = vadd.xlane.f32.xlu0 %v378_v12  ;;  %v487_v22 = vld [vmem:[%s1297_s4] sm:$0xff]  ;;  %v526_v23 = vld [vmem:[%s1299_s6 + $0x18] sm:$0xff]  ;;  %v525_v24 = vld [vmem:[%s1299_s6 + $0x10] sm:$0xff]  ;;  %s764_s24 = sshll.u32 %s345_s23, 4  ;;  %s977_s12 = sshll.u32 %s1054_s16, 4  ;;  %s765_s24 = int_to_ptr.vmem [resolvable:$true] %s764_s24  ;;  %s978_s12 = int_to_ptr.vmem [resolvable:$false] %s977_s12 }
  0x1a   : > { %876 = vmatprep.subr.msk.mxu0 %vm398_vm2, %v353_v13  ;;  %v524_v25 = vld [vmem:[%s1299_s6 + $0x8] sm:$0xff]  ;;  %v523_v26 = vld [vmem:[%s1299_s6] sm:$0xff]  ;;  %v521_v54 = vld [vmem:[%s1298_s5 + $0x10] sm:$0xff]  ;;  %s973_s29 = scalar_lea.vmem %s765_s24, 32  ;;  %s979_s15 = scalar_lea.vmem %s978_s12, 64 }
  0x1b   : > { %877 = vmatpush3.msk.msra.mxu0 %vm398_vm2, %v353_v13  ;;  %v650_v27 = vld [vmem:[%s1301_s8] sm:$0x3]  ;;  %v520_v53 = vld [vmem:[%s1298_s5 + $0x8] sm:$0xff]  ;;  %v522_v55 = vld [vmem:[%s1298_s5 + $0x18] sm:$0xff]  ;;  %p974_p12 = scmp.ne.s32.totalorder %s765_s24, %s973_s29  ;;  %p980_p1 = scmp.lt.s32.totalorder %s765_s24, %s978_s12 }
  0x1c   : > { %879 = vmatmul.mubr.msk.f32.vlgmr.msra.gmra.mxu0 %vm385_vm0, %v382_v14  ;;  %v519_v28 = vld [vmem:[%s1298_s5] sm:$0xff]  ;;  %898 = vmatprep.subr.mxu0 %v1052_v56  ;;  %p981_p2 = scmp.lt.s32.totalorder %s979_s15, %s973_s29 }
  0x1d   : > { %370 = vadd.xlane.f32.xlu1 %v369_v15  ;;  %881 = vmatprep.mubr.msk.f32.mxu0 %vm385_vm0, %v383_v16  ;;  %v649_v9 = vld [vmem:[%s1300_s7] sm:$0x3]  ;;  %p975_p13 = pnand %p974_p12, %p1145_p4 }
  0x1e   : > { %376 = vadd.xlane.f32.xlu0 %v375_v17  ;;  %892 = vmatprep.mubr.msk.f32.mxu1 %vm547_vm3, %v519_v28  ;;  %p982_p3 = por %p981_p2, %p980_p1 }
  0x1f   : > { %p976_p0 = pneg %p975_p13 }
  0x20   : > { %882 = vmatmul.mubr.msk.f32.gmra.mxu0 %vm385_vm0, %v384_v18 }
  0x21   : > { %906 = vmatprep.mubr.msk.f32.mxu0 %vm1053_vm4, %v1052_v56  ;;  %p983_p5 = pnand %p982_p3, %p976_p0 }
  0x2e   : > { %503 = vperm.xlu1 %968, %v489_v19  }
  0x32   : > { %498 = vperm.xlu1 %968, %v488_v20  }
  0x34   : > { %508 = vperm.xlu0 %967, %v490_v21  }
  0x36   : > { %493 = vperm.xlu1 %968, %v487_v22  }
  0x3a   : > { %544 = vperm.xlu1 %968, %v526_v23  }
  0x3e   : > { %539 = vperm.xlu1 %968, %v525_v24  }
  0x42   : > { %534 = vperm.xlu1 %968, %v524_v25  }
  0x46   : > { %529 = vperm.xlu1 %968, %v523_v26  }
  0x4a   : > { %653 = vperm.xlu1 %968, %v650_v27  }
  0xa2   : > { %v374_v29 = vpop.xlane.xlu1 %373  ;;  %v380_v31 = vpop.xlane.xlu0 %379 }
  0xa6   : > { %v371_v30 = vpop.xlane.xlu1 %370 }
  0xa7   : > { %v377_v33 = vpop.xlane.xlu0 %376 }
  0xaa   : > { %v504_v32 = vpop.permute.xlu1 %503 }
  0xae   : > { %v499_v36 = vpop.permute.xlu1 %498 }
  0xaf   : > { %v509_v38 = vpop.permute.xlu0 %508 }
  0xb2   : > { %v494_v48 = vpop.permute.xlu1 %493 }
  0xb6   : > { %v545_v57 = vpop.permute.xlu1 %544 }
  0xba   : > { %v540_v58 = vpop.permute.xlu1 %539 }
  0xbe   : > { %v535_v60 = vpop.permute.xlu1 %534 }
  0xc2   : > { %v530_v4 = vpop.permute.xlu1 %529 }
  0xc6   : > { %v654_v10 = vpop.permute.xlu1 %653 }
  0xdc   : > { %v880_v34 = vpop.f32.mrf.mxu0 }
  0xdd   : > { %v474_v39 = vadd.f32 %v880_v34, %v374_v29 }
  0xde   : > { %v468_v35 = vpop.f32.mrf.mxu0 }
  0xdf   : > { %v469_v42 = vadd.f32 %v468_v35, %v371_v30  ;;  %v512_v45 = vadd.f32 %v499_v36, %v474_v39 }
  0xe0   : > { %v883_v37 = vpop.f32.mrf.mxu0 }
  0xe1   : > { %v484_v40 = vadd.f32 %v883_v37, %v380_v31  ;;  %v511_v49 = vadd.f32 %v494_v48, %v469_v42  ;;  %v516_v51 = vmax.f32 %v512_v45, 0.0 }
  0xe2   : > { %v478_v41 = vpop.f32.mrf.mxu0 }
  0xe3   : > { %v514_v43 = vadd.f32 %v509_v38, %v484_v40  ;;  %v479_v44 = vadd.f32 %v478_v41, %v377_v33  ;;  %v515_v52 = vmax.f32 %v511_v49, 0.0 }
  0xe5   : > { %v518_v46 = vmax.f32 %v514_v43, 0.0  ;;  %v513_v47 = vadd.f32 %v504_v32, %v479_v44 }
  0xe7   : > { %v517_v50 = vmax.f32 %v513_v47, 0.0  ;;  %884 = vmatprep.subr.mxu1 %v518_v46 }
  0xe8   : > { %885 = vmatpush3.msra.mxu1 %v518_v46 }
  0xe9   : > { %886 = vmatprep.subr.mxu1 %v517_v50 }
  0xea   : > { %887 = vmatpush3.msra.mxu1 %v517_v50 }
  0xeb   : > { %888 = vmatprep.subr.mxu1 %v516_v51 }
  0xec   : > { %889 = vmatpush3.msra.mxu1 %v516_v51 }
  0xed   : > { %890 = vmatprep.subr.mxu1 %v515_v52 }
  0xee   : > { %891 = vmatpush3.msra.mxu1 %v515_v52 }
  0xef   : > { %893 = vmatmul.mubr.msk.f32.vlgmr.msra.gmra.mxu1 %vm547_vm3, %v520_v53 }
  0xf0   : > { %895 = vmatprep.mubr.msk.f32.mxu1 %vm547_vm3, %v521_v54 }
  0xf3   : > { %896 = vmatmul.mubr.msk.f32.gmra.mxu1 %vm547_vm3, %v522_v55 }
 0x1af   : > { %v894_v59 = vpop.f32.mrf.mxu1 }
 0x1b0   : > { %v632_v1 = vadd.f32 %v894_v59, %v535_v60 }
 0x1b1   : > { %v626_v61 = vpop.f32.mrf.mxu1 }
 0x1b2   : > { %v627_v5 = vadd.f32 %v626_v61, %v530_v4  ;;  %v646_v7 = vmax.f32 %v632_v1, 0.0 }
 0x1b3   : > { %v897_v62 = vpop.f32.mrf.mxu1 }
 0x1b4   : > { %v642_v63 = vadd.f32 %v897_v62, %v545_v57  ;;  %v645_v8 = vmax.f32 %v627_v5, 0.0 }
 0x1b5   : > { %v636_v0 = vpop.f32.mrf.mxu1 }
 0x1b6   : > { %v648_v2 = vmax.f32 %v642_v63, 0.0  ;;  %v637_v3 = vadd.f32 %v636_v0, %v540_v58 }
 0x1b8   : > { %v647_v6 = vmax.f32 %v637_v3, 0.0  ;;  %899 = vmatpush3.msra.mxu0 %v648_v2 }
 0x1b9   : > { %900 = vmatprep.subr.mxu0 %v1052_v56 }
 0x1ba   : > { %901 = vmatpush3.msra.mxu0 %v647_v6 }
 0x1bb   : > { %902 = vmatprep.subr.mxu0 %v1052_v56 }
 0x1bc   : > { %903 = vmatpush3.msra.mxu0 %v646_v7 }
 0x1bd   : > { %904 = vmatprep.subr.mxu0 %v1052_v56 }
 0x1be   : > { %905 = vmatpush3.msra.mxu0 %v645_v8 }
 0x1bf   : > { %907 = vmatmul.mubr.msk.f32.vlgmr.msra.gmra.mxu0 %vm547_vm3, %v649_v9 }
 0x27f   : > { %v725_v11 = vpop.f32.mrf.mxu0 }
 0x280   : > { %v726_v12 = vadd.f32 %v725_v11, %v654_v10 }
 0x281   : > { %v908_v13 = vpop.f32.mrf.mxu0 }
 0x282   : > { %v730_v14 = vand.u32 2147483647, %v726_v12  ;;  %v729_v25 = vmax.f32 %v726_v12, 0.0 }
 0x284   : > { %v731_v15 = vsub.f32 0.0, %v730_v14 }
 0x286   : > { %v732_v16 = vmul.f32 1.442695, %v731_v15 }
 0x288   : > { %969 = vpow2.f32 %v732_v16 }
 0x295   : > { %v970_v17 = vpop.eup %969 }
 0x296   : > { %v734_v18 = vadd.f32 1.0, %v970_v17  ;;  %v737_v19 = vmul.f32 -0.5, %v970_v17  ;;  %v740_v21 = vand.u32 2147483647, %v970_v17 }
 0x298   : > { %971 = vlog2.f32 %v734_v18  ;;  %v738_v20 = vadd.f32 1.0, %v737_v19  ;;  %vm741_vm5 = vcmp.lt.f32.partialorder %v740_v21, 0.0004427343 }
 0x29a   : > { %v739_v24 = vmul.f32 %v970_v17, %v738_v20 }
 0x2a5   : > { %v972_v22 = vpop.eup %971 }
 0x2a6   : > { %v736_v23 = vmul.f32 0.6931472, %v972_v22 }
 0x2a8   : > { %v742_v26 = vsel %vm741_vm5, %v739_v24, %v736_v23 }
 0x2a9   : > { %v743_v27 = vadd.f32 %v742_v26, %v729_v25 }
 0x2ab   : > { %v744_v28 = vmul.f32 0.9, %v743_v27 }
 0x2ad   : > { %v745_v29 = vadd.f32 0.1, %v744_v28 }
 0x2af   : > { %v747_v30 = vsel %vm746_vm6, %v726_v12, %v745_v29 }
 0x2b0   : > { %748 = vst [vmem:[%s345_s23] sm:$0x3] %v747_v30 }
 0x2b1   : > { %986 = shalt.err (!%p983_p5)
}
 0x2b2   : > { %s987_s20 = scalar_lea.hbm %s1253_s27, 32  ;;  %s991_s25 = scalar_lea.hbm %s1302_s9, 64 }
 0x2b3   : > { %p988_p6 = scmp.ne.s32.totalorder %s1253_s27, %s987_s20  ;;  %p992_p10 = scmp.lt.s32.totalorder %s1253_s27, %s1302_s9 }
 0x2b4   : > { %p993_p11 = scmp.lt.s32.totalorder %s991_s25, %s987_s20 }
 0x2b5   : > { %p989_p7 = pnand %p988_p6, %p1145_p4 }
 0x2b6   : > { %p994_p12 = por %p993_p11, %p992_p10 }
 0x2b7   : > { %p990_p9 = pneg %p989_p7 }
 0x2b9   : > { %p995_p13 = pnand %p994_p12, %p990_p9 }
 0x2bb   : > { %998 = shalt.err (!%p995_p13)
}
 0x2bc   : > { %909 = dma.vmem_to_hbm [thread:$0]  (%p1145_p4), %s765_s24, 32, %s1253_s27, %s750_s28  }
 0x2bd PF: > { %p915_p0 = scmp.ge.s32.totalorder %s1049_s14, 2  ;;  %s776_s29 = sand.u32 1, %s1029_s30  }
 0x2be   : > { %s777_s12 = scalar_lea.sflag [#allocation3], %s776_s29 }
 0x2bf   : > { %p912_p1 = pnand %p915_p0, %p1152_p8 }
 0x2c1   : > { %p913_p2 = pneg %p912_p1 }
 0x2c3   : > { %1024 = dma.done.wait (%p913_p2), %s777_s12, 32  }
 0x2c4   : > { %1026 = vsyncadd (%p913_p2), %s777_s12, 4294967264  ;;  %s22_s14 = sadd.s32 1, %s1049_s14   ;;  %s1305_s30 = smov %s1033_s10 }
 0x2c5   : > { %p19_p3 = scmp.ge.s32.totalorder %s22_s14, 4   ;;  %s1306_s10 = smov %s1037_s11 }
 0x2c6   : > { %s1307_s11 = smov %s1158_s22  ;;  %s1308_s12 = smov %s1045_s13 }
 0x2c7   : > { %s1309_s13 = smov %s1311_s17  ;;  %21 = sbr.rel (!%p19_p3) target bundleno = 4 (0x4), region = 92 }
 0x2cc   :  { %782 = vsyncpa [#allocation3], 1 }
 0x2cd   :  { %784 = vsyncpa [#allocation3 + $0x1], 1 }

</bundles_post_ra>
